<compile_context>
chip_gen: v5e
topology: v5e:2x2
jax: 0.10.0
libtpu: 0.0.40
codegen_flags: <defaults>
</compile_context>

<pallas_src>
import functools

import jax
import jax.numpy as jnp
from jax.experimental import pallas as pl
from jax.experimental.pallas import tpu as pltpu


# ----------------------------- Pallas kernel -------------------------------


def _lstm_forward_kernel(
    xh1_ref, hc_ref,                 # activations / packed state
    w1_ref, w2_ref, wmo_ref, wl1_ref, w23_ref, b_ref,   # packed weights/biases
    y_ref, hc_out_ref,               # outputs
):
    H = hc_ref.shape[-1] // 4        # 32

    def gates_to_hc(gates, c_prev):
        # PyTorch gate order [i, f, g, o]
        i = jax.nn.sigmoid(gates[:, 0 * H:1 * H])
        f = jax.nn.sigmoid(gates[:, 1 * H:2 * H])
        g = jnp.tanh(gates[:, 2 * H:3 * H])
        o = jax.nn.sigmoid(gates[:, 3 * H:4 * H])
        c_new = f * c_prev + i * g
        h_new = o * jnp.tanh(c_new)
        return h_new, c_new

    hc = hc_ref[...]                          # (N, 4H) = [h1, c1, h2, c2]
    c1_prev = hc[:, 1 * H:2 * H]
    h2_prev = hc[:, 2 * H:3 * H]
    c2_prev = hc[:, 3 * H:4 * H]

    # ---- LSTM layer 1: fused [x, h1] @ [Wih1; Whh1] -> one MXU dot ----
    gates1 = (jnp.dot(xh1_ref[...], w1_ref[...],
                      preferred_element_type=jnp.float32)
              + b_ref[0:1, 0:4 * H])
    h1_new, c1_new = gates_to_hc(gates1, c1_prev)
    a1 = jnp.maximum(h1_new, 0.0)             # ReLU

    # ---- LSTM layer 2: fused [relu(h1), h2] @ [Wih2; Whh2] ----
    a1h2 = jnp.concatenate([a1, h2_prev], axis=-1)            # (N, 2H)
    gates2 = (jnp.dot(a1h2, w2_ref[...],
                      preferred_element_type=jnp.float32)
              + b_ref[1:2, 0:4 * H])
    h2_new, c2_new = gates_to_hc(gates2, c2_prev)
    a2 = jnp.maximum(h2_new, 0.0)             # ReLU

    # ---- Maxout(H -> 128, pool=2): single 256-wide dot, max of lane halves ----
    mo_full = (jnp.dot(a2, wmo_ref[...],
                       preferred_element_type=jnp.float32)
               + b_ref[2:3, :])                               # (N, 256)
    mo = jnp.maximum(mo_full[:, 0:128], mo_full[:, 128:256])  # (N, 128)

    # ---- Linear(128,64)+ReLU, then folded Linear(64,32)·Linear(32,4) ----
    l1 = jnp.maximum(
        jnp.dot(mo, wl1_ref[...], preferred_element_type=jnp.float32)
        + b_ref[3:4, 0:64], 0.0)
    y = (jnp.dot(l1, w23_ref[...], preferred_element_type=jnp.float32)
         + b_ref[4:5, 0:y_ref.shape[-1]])
    y_ref[...] = y

    # lane-dense packed state write-back: one unmasked 128-lane store / DMA
    hc_out_ref[...] = jnp.concatenate(
        [h1_new, c1_new, h2_new, c2_new], axis=-1)


# ------------------------------ JAX wrapper ---------------------------------


def _full_spec(shape):
    # Whole-array block (block_shape == array shape satisfies TPU tiling rule).
    return pl.BlockSpec(shape, lambda: (0,) * len(shape))


def lstm_forward(x, hidden_layer1, hidden_layer2, params):
    """Replicates LSTM.forward.

    x:              (num_agents*batch_size, 1, input_size)
    hidden_layer1:  tuple (h0, c0), each (1, N, H)
    hidden_layer2:  tuple (h0, c0), each (1, N, H)
    Returns (y, (h1_new, c1_new), (h2_new, c2_new)) matching PyTorch semantics
    (y has shape (N, 1, 4); hidden states have shape (1, N, H)).
    """
    N = x.shape[0]
    H = hidden_layer1[0].shape[-1]
    out_dim = params["w23"].shape[-1]

    x2d = x.reshape(N, -1).astype(jnp.float32)
    h1_0 = hidden_layer1[0].reshape(N, H)
    c1_0 = hidden_layer1[1].reshape(N, H)
    h2_0 = hidden_layer2[0].reshape(N, H)
    c2_0 = hidden_layer2[1].reshape(N, H)

    # free (outside-kernel) packing: x‖h1 for the fused layer-1 dot, and a
    # lane-dense packed recurrent state (aliased to the packed state output).
    xh1 = jnp.concatenate([x2d, h1_0], axis=-1)                 # (N, in+H)
    hc_in = jnp.concatenate([h1_0, c1_0, h2_0, c2_0], axis=-1)  # (N, 4H)

    inputs = (
        xh1, hc_in,
        params["w1"], params["w2"], params["wmo"],
        params["wl1"], params["w23"], params["b_pack"],
    )

    out_shapes = (
        jax.ShapeDtypeStruct((N, out_dim), jnp.float32),   # y
        jax.ShapeDtypeStruct((N, 4 * H), jnp.float32),     # packed [h1,c1,h2,c2]
    )

    y, hc_out = pl.pallas_call(
        _lstm_forward_kernel,
        out_shape=out_shapes,
        in_specs=[_full_spec(a.shape) for a in inputs],
        out_specs=tuple(_full_spec(s.shape) for s in out_shapes),
        input_output_aliases={1: 1},   # donate hc_in buffer to hc_out
        compiler_params=pltpu.CompilerParams(dimension_semantics=()),
    )(*inputs)

    h1n = hc_out[:, 0 * H:1 * H].reshape(1, N, H)
    c1n = hc_out[:, 1 * H:2 * H].reshape(1, N, H)
    h2n = hc_out[:, 2 * H:3 * H].reshape(1, N, H)
    c2n = hc_out[:, 3 * H:4 * H].reshape(1, N, H)
    return y.reshape(N, 1, out_dim), (h1n, c1n), (h2n, c2n)


# ----------------------- deterministic parameter init -----------------------


def _uniform(key, shape, bound):
    return jax.random.uniform(key, shape, jnp.float32, -bound, bound)


def _pad_row(v, width):
    return jnp.pad(v, (0, width - v.shape[0]))[None, :]


def init_params(key, input_size, hidden):
    ks = list(jax.random.split(key, 16))
    kb_lstm = 1.0 / jnp.sqrt(hidden)

    # LSTM layer 1 (PyTorch: weight_ih (4H, in), weight_hh (4H, H), biases (4H,))
    wih1 = _uniform(ks[0], (4 * hidden, input_size), kb_lstm)
    whh1 = _uniform(ks[1], (4 * hidden, hidden), kb_lstm)
    bih1 = _uniform(ks[2], (4 * hidden,), kb_lstm)
    bhh1 = _uniform(ks[3], (4 * hidden,), kb_lstm)

    # LSTM layer 2
    wih2 = _uniform(ks[4], (4 * hidden, hidden), kb_lstm)
    whh2 = _uniform(ks[5], (4 * hidden, hidden), kb_lstm)
    bih2 = _uniform(ks[6], (4 * hidden,), kb_lstm)
    bhh2 = _uniform(ks[7], (4 * hidden,), kb_lstm)

    # Maxout linear: (256, hidden) -> consecutive pairs pooled
    kb_mo = 1.0 / jnp.sqrt(hidden)
    wmo = _uniform(ks[8], (256, hidden), kb_mo)
    bmo = _uniform(ks[9], (256,), kb_mo)

    # Linear1 (128->64), Linear2 (64->32), Linear3 (32->4)
    wl1 = _uniform(ks[10], (64, 128), 1.0 / jnp.sqrt(128.0))
    bl1 = _uniform(ks[11], (64,), 1.0 / jnp.sqrt(128.0))
    wl2 = _uniform(ks[12], (32, 64), 1.0 / jnp.sqrt(64.0))
    bl2 = _uniform(ks[13], (32,), 1.0 / jnp.sqrt(64.0))
    wl3 = _uniform(ks[14], (4, 32), 1.0 / jnp.sqrt(32.0))
    bl3 = _uniform(ks[15], (4,), 1.0 / jnp.sqrt(32.0))

    # ---------------- packed / fused parameters for the kernel ----------------
    # Fused per-cell weight: gates = [x, h] @ [Wih; Whh]^T_stacked + (bih + bhh)
    w1 = jnp.concatenate([wih1.T, whh1.T], axis=0)          # (in+H, 4H)
    w2 = jnp.concatenate([wih2.T, whh2.T], axis=0)          # (2H,   4H)
    b1 = bih1 + bhh1                                        # (4H,)
    b2 = bih2 + bhh2                                        # (4H,)

    # Maxout: pool pair k -> rows (2k, 2k+1) of the flat (256, H) weight.
    # Branch A = even rows, branch B = odd rows; fused along the lane axis.
    wmo_pack = jnp.concatenate([wmo[0::2, :].T, wmo[1::2, :].T], axis=1)  # (H,256)
    bmo_pack = jnp.concatenate([bmo[0::2], bmo[1::2]], axis=0)            # (256,)

    # Fold Linear2 and Linear3 (no nonlinearity in between): exact algebra.
    w23 = wl2.T @ wl3.T                                     # (64, 4)
    b23 = bl2 @ wl3.T + bl3                                 # (4,)

    # All biases packed into a single (5, 256) operand.
    b_pack = jnp.concatenate([
        _pad_row(b1, 256), _pad_row(b2, 256), bmo_pack[None, :],
        _pad_row(bl1, 256), _pad_row(b23, 256)], axis=0)    # (5, 256)

    params = {
        "w1": w1, "w2": w2, "wmo": wmo_pack,
        "wl1": wl1.T, "w23": w23, "b_pack": b_pack,
    }
    # keep the raw tensors too, for the pure-JAX reference check
    raw = dict(wih1=wih1, whh1=whh1, bih1=bih1, bhh1=bhh1,
               wih2=wih2, whh2=whh2, bih2=bih2, bhh2=bhh2,
               wmo=wmo, bmo=bmo, wl1=wl1, bl1=bl1, wl2=wl2, bl2=bl2,
               wl3=wl3, bl3=bl3)
    return params, raw


# --------------------------- pure-JAX reference ------------------------------


def reference_forward(x, hidden1, hidden2, raw, hidden_size):
    N = x.shape[0]
    H = hidden_size

    def cell(x2, h0, c0, wih, whh, bih, bhh):
        g = x2 @ wih.T + bih + h0 @ whh.T + bhh
        i = jax.nn.sigmoid(g[:, :H])
        f = jax.nn.sigmoid(g[:, H:2 * H])
        gg = jnp.tanh(g[:, 2 * H:3 * H])
        o = jax.nn.sigmoid(g[:, 3 * H:])
        c = f * c0 + i * gg
        h = o * jnp.tanh(c)
        return h, c

    x2 = x.reshape(N, -1)
    h1, c1 = cell(x2, hidden1[0][0], hidden1[1][0],
                  raw["wih1"], raw["whh1"], raw["bih1"], raw["bhh1"])
    a1 = jnp.maximum(h1, 0.0)
    h2, c2 = cell(a1, hidden2[0][0], hidden2[1][0],
                  raw["wih2"], raw["whh2"], raw["bih2"], raw["bhh2"])
    a2 = jnp.maximum(h2, 0.0)
    mo = a2 @ raw["wmo"].T + raw["bmo"]
    mo = mo.reshape(N, 128, 2).max(-1)
    l1 = jnp.maximum(mo @ raw["wl1"].T + raw["bl1"], 0.0)
    l2 = l1 @ raw["wl2"].T + raw["bl2"]
    y = l2 @ raw["wl3"].T + raw["bl3"]
    return y.reshape(N, 1, -1), (h1[None], c1[None]), (h2[None], c2[None])


# ----------------------------------- main ------------------------------------


if __name__ == "__main__":
    # Module hyper-parameters (from params dict of the original model)
    num_agents = 2
    batch_size = 2
    num_features = 4
    LSTM_hidden = 32
    # LSTM_num_layers = 1, LSTM_bidirectional = False (seq_len is forced to 1)
    input_size = 4 + num_agents + num_features + num_agents  # = 12
    N = num_agents * batch_size

    key = jax.random.PRNGKey(0)
    k_par, k_x, k_h1, k_c1, k_h2, k_c2 = jax.random.split(key, 6)

    params, raw = init_params(k_par, input_size, LSTM_hidden)

    x = jax.random.normal(k_x, (N, 1, input_size), jnp.float32)
    hidden_layer1 = (jax.random.normal(k_h1, (1, N, LSTM_hidden), jnp.float32),
                     jax.random.normal(k_c1, (1, N, LSTM_hidden), jnp.float32))
    hidden_layer2 = (jax.random.normal(k_h2, (1, N, LSTM_hidden), jnp.float32),
                     jax.random.normal(k_c2, (1, N, LSTM_hidden), jnp.float32))

    fwd = jax.jit(functools.partial(lstm_forward, params=params))
    y, hid1_new, hid2_new = fwd(x, hidden_layer1, hidden_layer2)
    jax.block_until_ready(y)

    # correctness check against pure-JAX reference (fusion only reorders sums)
    y_ref, hid1_ref, hid2_ref = reference_forward(
        x, hidden_layer1, hidden_layer2, raw, LSTM_hidden)
    assert jnp.allclose(y, y_ref, rtol=1e-5, atol=1e-4)
    assert jnp.allclose(hid1_new[0], hid1_ref[0], rtol=1e-5, atol=1e-4)
    assert jnp.allclose(hid1_new[1], hid1_ref[1], rtol=1e-5, atol=1e-4)
    assert jnp.allclose(hid2_new[0], hid2_ref[0], rtol=1e-5, atol=1e-4)
    assert jnp.allclose(hid2_new[1], hid2_ref[1], rtol=1e-5, atol=1e-4)

    print("KERNEL_OK")
</pallas_src>

<mosaic_0001>
module attributes {stable_mosaic.version = 11 : i64} {
  func.func @_lstm_forward_kernel(%arg0: memref<4x44xf32, #tpu.memory_space<vmem>>, %arg1: memref<4x128xf32, #tpu.memory_space<vmem>>, %arg2: memref<44x128xf32, #tpu.memory_space<vmem>>, %arg3: memref<64x128xf32, #tpu.memory_space<vmem>>, %arg4: memref<32x256xf32, #tpu.memory_space<vmem>>, %arg5: memref<128x64xf32, #tpu.memory_space<vmem>>, %arg6: memref<64x4xf32, #tpu.memory_space<vmem>>, %arg7: memref<5x256xf32, #tpu.memory_space<vmem>>, %arg8: memref<4x4xf32, #tpu.memory_space<vmem>>, %arg9: memref<4x128xf32, #tpu.memory_space<vmem>>) attributes {dimension_semantics = [], scalar_prefetch = 0 : i64, scratch_operands = 0 : i64, tpu.core_type = #tpu.core_type<tc>} {
    %c0 = arith.constant 0 : index
    %c0_0 = arith.constant 0 : index
    %0 = vector.load %arg1[%c0, %c0_0] : memref<4x128xf32, #tpu.memory_space<vmem>>, vector<4x128xf32>
    %1 = vector.extract_strided_slice %0 {offsets = [0, 32], sizes = [4, 32], strides = [1, 1]} : vector<4x128xf32> to vector<4x32xf32>
    %2 = vector.extract_strided_slice %0 {offsets = [0, 64], sizes = [4, 32], strides = [1, 1]} : vector<4x128xf32> to vector<4x32xf32>
    %3 = vector.extract_strided_slice %0 {offsets = [0, 96], sizes = [4, 32], strides = [1, 1]} : vector<4x128xf32> to vector<4x32xf32>
    %c0_1 = arith.constant 0 : index
    %c0_2 = arith.constant 0 : index
    %4 = vector.load %arg0[%c0_1, %c0_2] : memref<4x44xf32, #tpu.memory_space<vmem>>, vector<4x44xf32>
    %c0_3 = arith.constant 0 : index
    %c0_4 = arith.constant 0 : index
    %5 = vector.load %arg2[%c0_3, %c0_4] : memref<44x128xf32, #tpu.memory_space<vmem>>, vector<44x128xf32>
    %cst = arith.constant dense<0.000000e+00> : vector<4x128xf32>
    %6 = tpu.matmul %4, %5, %cst {dimension_numbers = #tpu.dot_dimension_numbers<[1], [0], [0], [1], [0, 0, 1, 1], [], []>} : vector<4x44xf32>, vector<44x128xf32>, vector<4x128xf32> -> vector<4x128xf32>
    %c0_5 = arith.constant 0 : index
    %c0_6 = arith.constant 0 : index
    %7 = vector.load %arg7[%c0_5, %c0_6] : memref<5x256xf32, #tpu.memory_space<vmem>>, vector<1x128xf32>
    %8 = vector.broadcast %7 : vector<1x128xf32> to vector<4x128xf32>
    %9 = arith.addf %6, %8 : vector<4x128xf32>
    %10 = vector.extract_strided_slice %9 {offsets = [0, 0], sizes = [4, 32], strides = [1, 1]} : vector<4x128xf32> to vector<4x32xf32>
    %11 = arith.negf %10 : vector<4x32xf32>
    %12 = math.exp %11 : vector<4x32xf32>
    %cst_7 = arith.constant 1.000000e+00 : f32
    %13 = vector.broadcast %cst_7 : f32 to vector<4x32xf32>
    %14 = arith.addf %13, %12 : vector<4x32xf32>
    %15 = arith.divf %13, %14 : vector<4x32xf32>
    %16 = vector.extract_strided_slice %9 {offsets = [0, 32], sizes = [4, 32], strides = [1, 1]} : vector<4x128xf32> to vector<4x32xf32>
    %17 = arith.negf %16 : vector<4x32xf32>
    %18 = math.exp %17 : vector<4x32xf32>
    %cst_8 = arith.constant 1.000000e+00 : f32
    %19 = vector.broadcast %cst_8 : f32 to vector<4x32xf32>
    %20 = arith.addf %19, %18 : vector<4x32xf32>
    %21 = arith.divf %19, %20 : vector<4x32xf32>
    %22 = vector.extract_strided_slice %9 {offsets = [0, 64], sizes = [4, 32], strides = [1, 1]} : vector<4x128xf32> to vector<4x32xf32>
    %23 = math.tanh %22 : vector<4x32xf32>
    %24 = vector.extract_strided_slice %9 {offsets = [0, 96], sizes = [4, 32], strides = [1, 1]} : vector<4x128xf32> to vector<4x32xf32>
    %25 = arith.negf %24 : vector<4x32xf32>
    %26 = math.exp %25 : vector<4x32xf32>
    %cst_9 = arith.constant 1.000000e+00 : f32
    %27 = vector.broadcast %cst_9 : f32 to vector<4x32xf32>
    %28 = arith.addf %27, %26 : vector<4x32xf32>
    %29 = arith.divf %27, %28 : vector<4x32xf32>
    %30 = arith.mulf %21, %1 : vector<4x32xf32>
    %31 = arith.mulf %15, %23 : vector<4x32xf32>
    %32 = arith.addf %30, %31 : vector<4x32xf32>
    %33 = math.tanh %32 : vector<4x32xf32>
    %34 = arith.mulf %29, %33 : vector<4x32xf32>
    %cst_10 = arith.constant 0.000000e+00 : f32
    %35 = vector.broadcast %cst_10 : f32 to vector<4x32xf32>
    %36 = arith.maximumf %34, %35 : vector<4x32xf32>
    %37 = tpu.concatenate %36, %2 in 1 : vector<4x32xf32>, vector<4x32xf32> -> vector<4x64xf32>
    %c0_11 = arith.constant 0 : index
    %c0_12 = arith.constant 0 : index
    %38 = vector.load %arg3[%c0_11, %c0_12] : memref<64x128xf32, #tpu.memory_space<vmem>>, vector<64x128xf32>
    %cst_13 = arith.constant dense<0.000000e+00> : vector<4x128xf32>
    %39 = tpu.matmul %37, %38, %cst_13 {dimension_numbers = #tpu.dot_dimension_numbers<[1], [0], [0], [1], [0, 0, 1, 1], [], []>} : vector<4x64xf32>, vector<64x128xf32>, vector<4x128xf32> -> vector<4x128xf32>
    %c1 = arith.constant 1 : index
    %c0_14 = arith.constant 0 : index
    %40 = vector.load %arg7[%c1, %c0_14] : memref<5x256xf32, #tpu.memory_space<vmem>>, vector<1x128xf32>
    %41 = vector.broadcast %40 : vector<1x128xf32> to vector<4x128xf32>
    %42 = arith.addf %39, %41 : vector<4x128xf32>
    %43 = vector.extract_strided_slice %42 {offsets = [0, 0], sizes = [4, 32], strides = [1, 1]} : vector<4x128xf32> to vector<4x32xf32>
    %44 = arith.negf %43 : vector<4x32xf32>
    %45 = math.exp %44 : vector<4x32xf32>
    %cst_15 = arith.constant 1.000000e+00 : f32
    %46 = vector.broadcast %cst_15 : f32 to vector<4x32xf32>
    %47 = arith.addf %46, %45 : vector<4x32xf32>
    %48 = arith.divf %46, %47 : vector<4x32xf32>
    %49 = vector.extract_strided_slice %42 {offsets = [0, 32], sizes = [4, 32], strides = [1, 1]} : vector<4x128xf32> to vector<4x32xf32>
    %50 = arith.negf %49 : vector<4x32xf32>
    %51 = math.exp %50 : vector<4x32xf32>
    %cst_16 = arith.constant 1.000000e+00 : f32
    %52 = vector.broadcast %cst_16 : f32 to vector<4x32xf32>
    %53 = arith.addf %52, %51 : vector<4x32xf32>
    %54 = arith.divf %52, %53 : vector<4x32xf32>
    %55 = vector.extract_strided_slice %42 {offsets = [0, 64], sizes = [4, 32], strides = [1, 1]} : vector<4x128xf32> to vector<4x32xf32>
    %56 = math.tanh %55 : vector<4x32xf32>
    %57 = vector.extract_strided_slice %42 {offsets = [0, 96], sizes = [4, 32], strides = [1, 1]} : vector<4x128xf32> to vector<4x32xf32>
    %58 = arith.negf %57 : vector<4x32xf32>
    %59 = math.exp %58 : vector<4x32xf32>
    %cst_17 = arith.constant 1.000000e+00 : f32
    %60 = vector.broadcast %cst_17 : f32 to vector<4x32xf32>
    %61 = arith.addf %60, %59 : vector<4x32xf32>
    %62 = arith.divf %60, %61 : vector<4x32xf32>
    %63 = arith.mulf %54, %3 : vector<4x32xf32>
    %64 = arith.mulf %48, %56 : vector<4x32xf32>
    %65 = arith.addf %63, %64 : vector<4x32xf32>
    %66 = math.tanh %65 : vector<4x32xf32>
    %67 = arith.mulf %62, %66 : vector<4x32xf32>
    %cst_18 = arith.constant 0.000000e+00 : f32
    %68 = vector.broadcast %cst_18 : f32 to vector<4x32xf32>
    %69 = arith.maximumf %67, %68 : vector<4x32xf32>
    %c0_19 = arith.constant 0 : index
    %c0_20 = arith.constant 0 : index
    %70 = vector.load %arg4[%c0_19, %c0_20] : memref<32x256xf32, #tpu.memory_space<vmem>>, vector<32x256xf32>
    %cst_21 = arith.constant dense<0.000000e+00> : vector<4x256xf32>
    %71 = tpu.matmul %69, %70, %cst_21 {dimension_numbers = #tpu.dot_dimension_numbers<[1], [0], [0], [1], [0, 0, 1, 1], [], []>} : vector<4x32xf32>, vector<32x256xf32>, vector<4x256xf32> -> vector<4x256xf32>
    %c2 = arith.constant 2 : index
    %c0_22 = arith.constant 0 : index
    %72 = vector.load %arg7[%c2, %c0_22] : memref<5x256xf32, #tpu.memory_space<vmem>>, vector<1x256xf32>
    %73 = vector.broadcast %72 : vector<1x256xf32> to vector<4x256xf32>
    %74 = arith.addf %71, %73 : vector<4x256xf32>
    %75 = vector.extract_strided_slice %74 {offsets = [0, 0], sizes = [4, 128], strides = [1, 1]} : vector<4x256xf32> to vector<4x128xf32>
    %76 = vector.extract_strided_slice %74 {offsets = [0, 128], sizes = [4, 128], strides = [1, 1]} : vector<4x256xf32> to vector<4x128xf32>
    %77 = arith.maximumf %75, %76 : vector<4x128xf32>
    %c0_23 = arith.constant 0 : index
    %c0_24 = arith.constant 0 : index
    %78 = vector.load %arg5[%c0_23, %c0_24] : memref<128x64xf32, #tpu.memory_space<vmem>>, vector<128x64xf32>
    %cst_25 = arith.constant dense<0.000000e+00> : vector<4x64xf32>
    %79 = tpu.matmul %77, %78, %cst_25 {dimension_numbers = #tpu.dot_dimension_numbers<[1], [0], [0], [1], [0, 0, 1, 1], [], []>} : vector<4x128xf32>, vector<128x64xf32>, vector<4x64xf32> -> vector<4x64xf32>
    %c3 = arith.constant 3 : index
    %c0_26 = arith.constant 0 : index
    %80 = vector.load %arg7[%c3, %c0_26] : memref<5x256xf32, #tpu.memory_space<vmem>>, vector<1x64xf32>
    %81 = vector.broadcast %80 : vector<1x64xf32> to vector<4x64xf32>
    %82 = arith.addf %79, %81 : vector<4x64xf32>
    %cst_27 = arith.constant 0.000000e+00 : f32
    %83 = vector.broadcast %cst_27 : f32 to vector<4x64xf32>
    %84 = arith.maximumf %82, %83 : vector<4x64xf32>
    %c0_28 = arith.constant 0 : index
    %c0_29 = arith.constant 0 : index
    %85 = vector.load %arg6[%c0_28, %c0_29] : memref<64x4xf32, #tpu.memory_space<vmem>>, vector<64x4xf32>
    %cst_30 = arith.constant dense<0.000000e+00> : vector<4x4xf32>
    %86 = tpu.matmul %84, %85, %cst_30 {dimension_numbers = #tpu.dot_dimension_numbers<[1], [0], [0], [1], [0, 0, 1, 1], [], []>} : vector<4x64xf32>, vector<64x4xf32>, vector<4x4xf32> -> vector<4x4xf32>
    %c4 = arith.constant 4 : index
    %c0_31 = arith.constant 0 : index
    %87 = vector.load %arg7[%c4, %c0_31] : memref<5x256xf32, #tpu.memory_space<vmem>>, vector<1x4xf32>
    %88 = vector.broadcast %87 : vector<1x4xf32> to vector<4x4xf32>
    %89 = arith.addf %86, %88 : vector<4x4xf32>
    %c0_32 = arith.constant 0 : index
    %c0_33 = arith.constant 0 : index
    %90 = vector.load %arg8[%c0_32, %c0_33] : memref<4x4xf32, #tpu.memory_space<vmem>>, vector<4x4xf32>
    tpu.vector_store %arg8[%c0_32, %c0_33], %89 {strides = array<i32>} : memref<4x4xf32, #tpu.memory_space<vmem>>, vector<4x4xf32>,
    %91 = tpu.concatenate %34, %32, %67, %65 in 1 : vector<4x32xf32>, vector<4x32xf32>, vector<4x32xf32>, vector<4x32xf32> -> vector<4x128xf32>
    %c0_34 = arith.constant 0 : index
    %c0_35 = arith.constant 0 : index
    %92 = vector.load %arg9[%c0_34, %c0_35] : memref<4x128xf32, #tpu.memory_space<vmem>>, vector<4x128xf32>
    tpu.vector_store %arg9[%c0_34, %c0_35], %91 {strides = array<i32>} : memref<4x128xf32, #tpu.memory_space<vmem>>, vector<4x128xf32>,
    return
  }
}

</mosaic_0001>

<bundles_post_ra>
// kernel: lstm_forward.1
= control target key start
LH: loop header
LB: loop body
LE: loop exit
PB: predicated region body
PF: predicated region fallthrough
CT: control target
= control target key end

     0   :  { %15 = vsyncpa [#allocation3], 0  ;;  %s773_s0 = inlined_call_operand.vmem [shape: f32[4,44], index: 0, kind: input, shape index: {}]   ;;  %s774_s1 = inlined_call_operand.vmem [shape: f32[4,128], index: 1, kind: input, shape index: {}, may-alias: {1,9}]   ;;  %s775_s2 = inlined_call_operand.hbm [shape: f32[44,128], index: 2, kind: input, shape index: {}]   ;;  %s776_s3 = inlined_call_operand.hbm [shape: f32[64,128], index: 3, kind: input, shape index: {}]   ;;  %s777_s4 = inlined_call_operand.hbm [shape: f32[32,256], index: 4, kind: input, shape index: {}]   ;;  %s778_s5 = inlined_call_operand.hbm [shape: f32[128,64], index: 5, kind: input, shape index: {}]   ;;  %s779_s6 = inlined_call_operand.hbm [shape: f32[64,4], index: 6, kind: input, shape index: {}]   ;;  %s780_s7 = inlined_call_operand.vmem [shape: f32[5,256], index: 7, kind: input, shape index: {}]   ;;  %s781_s8 = inlined_call_operand.hbm [shape: f32[4,4], index: 8, kind: output, shape index: {0}]   ;;  %s782_s9 = inlined_call_operand.vmem [shape: f32[4,128], index: 9, kind: output, shape index: {1}, may-alias: {1,9}]  }
   0x1   :  { %16 = vsyncpa [#allocation6], 0 }
   0x2   :  { %17 = vsyncpa [#allocation9], 0 }
   0x3   :  { %18 = vsyncpa [#allocation4], 0  ;;  %s40_s11 = sshll.u32 %s776_s3, 4  ;;  %s632_s12 = smov [#allocation5]   ;;  %s41_s11 = int_to_ptr.hbm [resolvable:$true] %s40_s11 }
   0x4   :  { %s42_s13 = sshll.u32 %s632_s12, 4  ;;  %s66_s16 = sshll.u32 %s778_s5, 4  ;;  %s43_s13 = int_to_ptr.vmem [resolvable:$true] %s42_s13  ;;  %s67_s16 = int_to_ptr.hbm [resolvable:$true] %s66_s16 }
   0x5   :  { %s633_s17 = smov 128   ;;  %s634_s18 = smov 8  }
   0x6   :  { %48 = dma.hbm_to_vmem [thread:$0]  %s41_s11, 1024, %s43_s13, [#allocation6], %s633_s17, %s633_s17, %s634_s18  }
   0x7   :  { %s635_s19 = smov [#allocation8]   ;;  %s27_s3 = sshll.u32 %s775_s2, 4  ;;  %s28_s3 = int_to_ptr.hbm [resolvable:$true] %s27_s3 }
   0x8   :  { %s68_s20 = sshll.u32 %s635_s19, 4  ;;  %s53_s24 = sshll.u32 %s777_s4, 4  ;;  %s69_s20 = int_to_ptr.vmem [resolvable:$true] %s68_s20  ;;  %s54_s24 = int_to_ptr.hbm [resolvable:$true] %s53_s24 }
   0x9   :  { %74 = dma.hbm_to_vmem [thread:$0]  %s67_s16, 2048, %s69_s20, [#allocation9], %s633_s17, %s633_s17, %s634_s18  }
   0xa   :  { %s636_s25 = smov [#allocation2]   ;;  %s637_s27 = smov [#allocation7]  }
   0xb   :  { %s29_s26 = sshll.u32 %s636_s25, 4  ;;  %s55_s2 = sshll.u32 %s637_s27, 4  ;;  %s30_s26 = int_to_ptr.vmem [resolvable:$true] %s29_s26  ;;  %s56_s2 = int_to_ptr.vmem [resolvable:$true] %s55_s2 }
   0xc   :  { %35 = dma.hbm_to_vmem [thread:$0]  %s28_s3, 768, %s30_s26, [#allocation3], %s633_s17, %s633_s17, %s634_s18  }
   0xd   :  { %s638_s28 = smov 256   ;;  %s639_s29 = smov 16  }
   0xe   :  { %61 = dma.hbm_to_vmem [thread:$0]  %s54_s24, 1024, %s56_s2, [#allocation6], %s638_s28, %s638_s28, %s639_s29  }
   0xf   :  { %s79_s11 = sshll.u32 %s779_s6, 4  ;;  %s640_s4 = smov [#allocation10]   ;;  %s80_s11 = int_to_ptr.hbm [resolvable:$true] %s79_s11 }
  0x10   :  { %s81_s12 = sshll.u32 %s640_s4, 4  ;;  %s82_s12 = int_to_ptr.vmem [resolvable:$true] %s81_s12 }
  0x11   :  { %87 = dma.hbm_to_vmem [thread:$0]  %s80_s11, 1024, %s82_s12, [#allocation9], %s633_s17, %s633_s17, %s634_s18  }
  0x12   :  { %624 = dma.done.wait [#allocation3], 768  }
  0x13   :  { %625 = vsyncadd [#allocation3], 4294966528 }
  0x14   :  { %626 = dma.done.wait [#allocation6], 2048  }
  0x15   :  { %627 = vsyncadd [#allocation6], 4294965248 }
  0x16   :  { %628 = dma.done.wait [#allocation9], 3072  }
  0x17   :  { %629 = vsyncadd [#allocation9], 4294964224  ;;  %vm123_vm0 = vcmask 1043456   ;;  %v117_v0 = vld [vmem:[#allocation2 + $0x28] sm:$0xf]  ;;  %v116_v1 = vld [vmem:[#allocation2 + $0x20] sm:$0xff] }
  0x18   :  { %442 = vmatpush.msk.msra.mxu0 %vm123_vm0, %v117_v0  ;;  %v115_v2 = vld [vmem:[#allocation2 + $0x18] sm:$0xff]  ;;  %v114_v3 = vld [vmem:[#allocation2 + $0x10] sm:$0xff]  ;;  %v113_v4 = vld [vmem:[#allocation2 + $0x8] sm:$0xff]  ;;  %vm119_vm1 = vcmask 359424   ;;  %s641_s16 = smov 64   ;;  %s643_s19 = smov 96  }
  0x19   :  { %v112_v5 = vld [vmem:[#allocation2] sm:$0xff]  ;;  %v202_v31 = vld [vmem:[#allocation5 + $0x38] sm:$0xff]  ;;  %v200_v33 = vld [vmem:[#allocation5 + $0x28] sm:$0xff]  ;;  %vm193_vm6 = vcmask 261120   ;;  %vm204_vm7 = vcmask 523264   ;;  %vm416_vm12 = vcmask 785408  }
  0x1a   :  { %138 = vmatpush.msra.mxu0 %v116_v1  ;;  %v111_v6 = vld [vmem:[%s773_s0] sm:$0xf]  ;;  %s642_s0 = smov 32   ;;  %216 = vmatpush.msra.mxu1 %v202_v31  ;;  %v199_v34 = vld [vmem:[#allocation5 + $0x20] sm:$0xff]  ;;  %v198_v35 = vld [vmem:[#allocation5 + $0x18] sm:$0xff]  ;;  %s644_s26 = smov [#allocation11]  }
  0x1b   :  { %v118_v7 = vld [vmem:[%s780_s7] ss:$0 sm:$0xff]  ;;  %v196_v37 = vld [vmem:[#allocation5 + $0x8] sm:$0xff]  ;;  %v195_v41 = vld [vmem:[#allocation5] sm:$0xff]  ;;  %s424_s27 = sshll.u32 %s644_s26, 4  ;;  %s426_s29 = sshll.u32 %s781_s8, 4  ;;  %s425_s27 = int_to_ptr.vmem [resolvable:$true] %s424_s27  ;;  %s427_s29 = int_to_ptr.hbm [resolvable:$true] %s426_s29 }
  0x1c   :  { %139 = vmatpush.msra.mxu0 %v115_v2  ;;  %v110_v26 = vld [vmem:[%s774_s1] sm:$0xf]  ;;  %vm400_vm13 = vcmask 27648  }
  0x1d   :  { %190 = vrot.lane.b32.xlu2 %v110_v26, %s643_s19  ;;  %v201_v32 = vld [vmem:[#allocation5 + $0x30] sm:$0xff] }
  0x1e   :  { %140 = vmatpush.msra.mxu0 %v114_v3  ;;  %217 = vmatpush.msra.mxu1 %v201_v32  ;;  %v197_v36 = vld [vmem:[#allocation5 + $0x10] sm:$0xff] }
  0x1f   :  { %v203_v45 = vld [vmem:[%s780_s7 + $0x1] ss:$0 sm:$0xff] }
  0x20   :  { %141 = vmatpush.msra.mxu0 %v113_v4  ;;  %218 = vmatpush.msra.mxu1 %v200_v33 }
  0x22   :  { %142 = vmatpush.msra.mxu0 %v112_v5  ;;  %219 = vmatpush.msra.mxu1 %v199_v34  ;;  %v335_v34 = vld [vmem:[#allocation8 + $0x28] sm:$0xff] }
  0x23   :  { %443 = vmatmul.msk.f32.vlgmr.msra.gmra.mxu0 %vm119_vm1, %v111_v6 }
  0x24   :  { %220 = vmatpush.msra.mxu1 %v198_v35  ;;  %v334_v35 = vld [vmem:[#allocation8 + $0x20] sm:$0xff] }
  0x26   :  { %221 = vmatpush.msra.mxu1 %v197_v36  ;;  %v333_v36 = vld [vmem:[#allocation8 + $0x18] sm:$0xff] }
  0x28   :  { %222 = vmatpush.msra.mxu1 %v196_v37  ;;  %v332_v37 = vld [vmem:[#allocation8 + $0x10] sm:$0xff] }
  0x2a   :  { %223 = vmatpush.msra.mxu1 %v195_v41  ;;  %v373_v41 = vld [vmem:[#allocation10 + $0x28] sm:$0xff] }
  0x77   :  { %v191_v42 = vpop.permute.xlu2 %190 }
  0xa0   :  { %v144_v8 = vpop.f32.mrf.mxu0 }
  0xa1   :  { %v145_v9 = vadd.f32 %v144_v8, %v118_v7  ;;  %v275_v8 = vld [vmem:[#allocation7 + $0x30] sm:$0xff] }
  0xa2   :  { %301 = vmatpush.msrb.mxu0 %v275_v8 }
  0xa3   :  { %464 = vtanh.f32 %v145_v9  ;;  %v444_v11 = vmul.f32 -1.442695, %v145_v9  ;;  %v276_v9 = vld [vmem:[#allocation7 + $0x38] sm:$0xff] }
  0xa4   :  { %321 = vmatpush.msra.mxu3 %v276_v9 }
  0xa5   :  { %466 = vpow2.f32 %v444_v11  ;;  %v274_v11 = vld [vmem:[#allocation7 + $0x28] sm:$0xff] }
  0xa6   :  { %322 = vmatpush.msra.mxu3 %v274_v11 }
  0xa9   :  { %v465_v10 = vpop.eup %464 }
  0xaa   :  { %169 = vrot.lane.b32.xlu0 %v465_v10, %s641_s16  ;;  %v273_v10 = vld [vmem:[#allocation7 + $0x20] sm:$0xff] }
  0xab   :  { %v467_v12 = vpop.eup %466  ;;  %302 = vmatpush.msrb.mxu0 %v273_v10 }
  0xac   :  { %v150_v13 = vadd.f32 1.0, %v467_v12  ;;  %v271_v12 = vld [vmem:[#allocation7 + $0x10] sm:$0xff] }
  0xad   :  { %303 = vmatpush.msrb.mxu0 %v271_v12 }
  0xae   :  { %468 = vrcp.f32 %v150_v13  ;;  %v162_v19 = vand.u32 2147483648, %v150_v13  ;;  %vm156_vm3 = vweird.f32 %v150_v13  ;;  %v160_v20 = vand.u32 2147483647, %v150_v13 }
  0xb0   :  { %v163_v22 = vor.u32 1.1754944e-38, %v162_v19  ;;  %vm161_vm5 = vcmp.eq.f32.partialorder %v160_v20, 8.507059e+37  ;;  %v342_v19 = vld [vmem:[#allocation8 + $0x60] sm:$0xff]  ;;  %v341_v20 = vld [vmem:[#allocation8 + $0x58] sm:$0xff] }
  0xb4   :  { %v469_v14 = vpop.eup %468 }
  0xb5   :  { %v152_v15 = vmul.f32 %v469_v14, %v150_v13  ;;  %vm157_vm2 = vweird.f32 %v469_v14  ;;  %v272_v13 = vld [vmem:[#allocation7 + $0x18] sm:$0xff] }
  0xb6   :  { %vm158_vm4 = vmor %vm156_vm3, %vm157_vm2  ;;  %323 = vmatpush.msra.mxu3 %v272_v13 }
  0xb7   :  { %v153_v16 = vsub.f32 1.0, %v152_v15  ;;  %v270_v15 = vld [vmem:[#allocation7 + $0x8] sm:$0xff] }
  0xb8   :  { %324 = vmatpush.msra.mxu3 %v270_v15 }
  0xb9   :  { %v154_v17 = vmul.f32 %v469_v14, %v153_v16  ;;  %v345_v16 = vld [vmem:[#allocation8 + $0x78] sm:$0xff] }
  0xba   :  { %347 = vmatpush.msra.mxu2 %v345_v16 }
  0xbb   :  { %v155_v18 = vadd.f32 %v469_v14, %v154_v17  ;;  %v344_v17 = vld [vmem:[#allocation8 + $0x70] sm:$0xff] }
  0xbc   :  { %348 = vmatpush.msra.mxu2 %v344_v17 }
  0xbd   :  { %v159_v21 = vsel %vm158_vm4, %v469_v14, %v155_v18  ;;  %v269_v14 = vld [vmem:[#allocation7] sm:$0xff]  ;;  %v343_v18 = vld [vmem:[#allocation8 + $0x68] sm:$0xff] }
  0xbe   :  { %v164_v24 = vsel %vm161_vm5, %v163_v22, %v159_v21  ;;  %304 = vmatpush.msrb.mxu0 %v269_v14  ;;  %349 = vmatpush.msra.mxu2 %v343_v18  ;;  %v340_v21 = vld [vmem:[#allocation8 + $0x50] sm:$0xff]  ;;  %v339_v22 = vld [vmem:[#allocation8 + $0x48] sm:$0xff] }
  0xbf   :  { %v167_v27 = vmul.f32 %v164_v24, %v110_v26 }
  0xc0   :  { %350 = vmatpush.msra.mxu2 %v342_v19 }
  0xc2   :  { %351 = vmatpush.msra.mxu2 %v341_v20 }
  0xc4   :  { %352 = vmatpush.msra.mxu2 %v340_v21 }
  0xc6   :  { %353 = vmatpush.msra.mxu2 %v339_v22 }
 0x11c   :  { %v170_v23 = vpop.permute.xlu0 %169 }
 0x11d   :  { %v172_v25 = vmul.f32 %v170_v23, %v164_v24  ;;  %v338_v23 = vld [vmem:[#allocation8 + $0x40] sm:$0xff] }
 0x11e   :  { %354 = vmatpush.msra.mxu2 %v338_v23 }
 0x11f   :  { %174 = vrot.lane.b32.xlu0 %v172_v25, %s642_s0  ;;  %v336_v25 = vld [vmem:[#allocation8 + $0x30] sm:$0xff] }
 0x127   :  { %248 = vrot.lane.b32.xlu0 %v110_v26, %s641_s16 }
 0x191   :  { %v175_v28 = vpop.permute.xlu0 %174 }
 0x192   :  { %v734_v29 = vadd.f32 %v175_v28, %v167_v27 }
 0x194   :  { %470 = vtanh.f32 %v734_v29 }
 0x199   :  { %v249_v0 = vpop.permute.xlu0 %248 }
 0x19a   :  { %v471_v30 = vpop.eup %470 }
 0x19b   :  { %180 = vrot.lane.b32.xlu1 %v471_v30, %s641_s16 }
 0x20d   :  { %v181_v38 = vpop.permute.xlu1 %180 }
 0x20e   :  { %v183_v39 = vmul.f32 %v181_v38, %v164_v24  ;;  %v337_v24 = vld [vmem:[#allocation8 + $0x38] sm:$0xff]  ;;  %v331_v38 = vld [vmem:[#allocation8 + $0x8] sm:$0xff] }
 0x20f   :  { %355 = vmatpush.msra.mxu2 %v337_v24 }
 0x210   :  { %v184_v40 = vmax.f32 %v183_v39, 0.0 }
 0x211   :  { %356 = vmatpush.msra.mxu2 %v336_v25 }
 0x212   :  { %186 = vrot.lane.b32.xlu1 %v184_v40, %s642_s0  ;;  %v374_v40 = vld [vmem:[#allocation10 + $0x30] sm:$0xff] }
 0x213   :  { %357 = vmatpush.msra.mxu2 %v335_v34 }
 0x215   :  { %358 = vmatpush.msra.mxu2 %v334_v35 }
 0x217   :  { %359 = vmatpush.msra.mxu2 %v333_v36 }
 0x219   :  { %360 = vmatpush.msra.mxu2 %v332_v37 }
 0x21b   :  { %361 = vmatpush.msra.mxu2 %v331_v38 }
 0x284   :  { %v187_v43 = vpop.permute.xlu1 %186 }
 0x285   :  { %v194_v44 = vsel %vm193_vm6, %v187_v43, %v191_v42  ;;  %v372_v42 = vld [vmem:[#allocation10 + $0x20] sm:$0xff]  ;;  %v371_v43 = vld [vmem:[#allocation10 + $0x18] sm:$0xff] }
 0x286   :  { %445 = vmatmul.msk.f32.vlgmr.msra.gmra.mxu1 %vm204_vm7, %v194_v44  ;;  %v447_v44 = vld [vmem:[%s780_s7 + $0x2] ss:$8 sm:$0x3] }
 0x303   :  { %v225_v46 = vpop.f32.mrf.mxu1 }
 0x304   :  { %v226_v47 = vadd.f32 %v225_v46, %v203_v45  ;;  %v280_v45 = vperm.slane %v447_v44, 0  ;;  %v281_v46 = vperm.slane %v447_v44, 1 }
 0x306   :  { %472 = vtanh.f32 %v226_v47  ;;  %v446_v49 = vmul.f32 -1.442695, %v226_v47 }
 0x308   :  { %474 = vpow2.f32 %v446_v49 }
 0x30c   :  { %v473_v48 = vpop.eup %472 }
 0x30d   :  { %253 = vrot.lane.b32.xlu2 %v473_v48, %s641_s16 }
 0x30e   :  { %v475_v50 = vpop.eup %474 }
 0x30f   :  { %v231_v51 = vadd.f32 1.0, %v475_v50 }
 0x311   :  { %476 = vrcp.f32 %v231_v51  ;;  %v243_v57 = vand.u32 2147483648, %v231_v51  ;;  %vm237_vm9 = vweird.f32 %v231_v51  ;;  %v241_v58 = vand.u32 2147483647, %v231_v51 }
 0x313   :  { %v244_v60 = vor.u32 1.1754944e-38, %v243_v57  ;;  %vm242_vm11 = vcmp.eq.f32.partialorder %v241_v58, 8.507059e+37 }
 0x317   :  { %v477_v52 = vpop.eup %476 }
 0x318   :  { %v233_v53 = vmul.f32 %v477_v52, %v231_v51  ;;  %vm238_vm8 = vweird.f32 %v477_v52 }
 0x319   :  { %vm239_vm10 = vmor %vm237_vm9, %vm238_vm8 }
 0x31a   :  { %v234_v54 = vsub.f32 1.0, %v233_v53  ;;  %v369_v53 = vld [vmem:[#allocation10 + $0x8] sm:$0xff] }
 0x31c   :  { %v235_v55 = vmul.f32 %v477_v52, %v234_v54  ;;  %v368_v54 = vld [vmem:[#allocation10] sm:$0xff] }
 0x31e   :  { %v236_v56 = vadd.f32 %v477_v52, %v235_v55  ;;  %v346_v55 = vld [vmem:[%s780_s7 + $0x3] ss:$0 sm:$0xff] }
 0x320   :  { %v240_v59 = vsel %vm239_vm10, %v477_v52, %v236_v56  ;;  %v370_v52 = vld [vmem:[#allocation10 + $0x10] sm:$0xff] }
 0x321   :  { %v245_v61 = vsel %vm242_vm11, %v244_v60, %v240_v59  ;;  %v376_v59 = vld [vmem:[%s780_s7 + $0x4] ss:$0 sm:$0xff] }
 0x322   :  { %v251_v1 = vmul.f32 %v249_v0, %v245_v61 }
 0x367   :  { %v254_v62 = vpop.permute.xlu2 %253 }
 0x368   :  { %v256_v63 = vmul.f32 %v254_v62, %v245_v61 }
 0x36a   :  { %258 = vrot.lane.b32.xlu1 %v256_v63, %s642_s0 }
 0x372   :  { %403 = vrot.lane.b32.xlu1 %v183_v39, %s642_s0  ;;  %v330_v39 = vld [vmem:[#allocation8] sm:$0xff] }
 0x373   :  { %362 = vmatpush.msra.mxu2 %v330_v39 }
 0x3dc   :  { %v259_v2 = vpop.permute.xlu1 %258 }
 0x3dd   :  { %v261_v3 = vadd.f32 %v259_v2, %v251_v1 }
 0x3df   :  { %478 = vtanh.f32 %v261_v3 }
 0x3e4   :  { %v404_v27 = vpop.permute.xlu1 %403 }
 0x3e5   :  { %v479_v4 = vpop.eup %478  ;;  %v414_v30 = vsel %vm193_vm6, %v404_v27, %v734_v29  ;;  %v375_v29 = vld [vmem:[#allocation10 + $0x38] sm:$0xff] }
 0x3e6   :  { %264 = vrot.lane.b32.xlu2 %v479_v4, %s641_s16  ;;  %388 = vmatpush.msrb.mxu3 %v375_v29 }
 0x3e8   :  { %389 = vmatpush.msrb.mxu3 %v374_v40 }
 0x3ea   :  { %390 = vmatpush.msrb.mxu3 %v373_v41 }
 0x3ec   :  { %391 = vmatpush.msrb.mxu3 %v372_v42 }
 0x3ee   :  { %392 = vmatpush.msrb.mxu3 %v371_v43 }
 0x3f0   :  { %393 = vmatpush.msrb.mxu3 %v370_v52 }
 0x3f2   :  { %394 = vmatpush.msrb.mxu3 %v369_v53 }
 0x3f4   :  { %395 = vmatpush.msrb.mxu3 %v368_v54 }
 0x440   :  { %v265_v5 = vpop.permute.xlu2 %264 }
 0x441   :  { %v267_v6 = vmul.f32 %v265_v5, %v245_v61 }
 0x443   :  { %v268_v7 = vmax.f32 %v267_v6, 0.0  ;;  %407 = vrot.lane.b32.xlu2 %v267_v6, %s643_s19 }
 0x445   :  { %285 = vrot.lane.b32.xlu0 %v268_v7, %s642_s0 }
 0x44d   :  { %411 = vrot.lane.b32.xlu0 %v261_v3, %s641_s16 }
 0x49d   :  { %v408_v28 = vpop.permute.xlu2 %407 }
 0x49e   :  { %v415_v31 = vsel %vm204_vm7, %v414_v30, %v408_v28 }
 0x4b7   :  { %v286_v26 = vpop.permute.xlu0 %285 }
 0x4b8   :  { %448 = vmatmul.msk.f32.vlgmr.msrb.gmra.mxu0 %vm193_vm6, %v286_v26  ;;  %449 = vmatmul.msk.f32.vlgmr.msra.gmra.mxu3 %vm193_vm6, %v286_v26 }
 0x4bf   :  { %v412_v32 = vpop.permute.xlu0 %411 }
 0x4c0   :  { %v417_v33 = vsel %vm416_vm12, %v415_v31, %v412_v32 }
 0x4c1   :  { %418 = vst [vmem:[%s782_s9] sm:$0xf] %v417_v33 }
 0x535   :  { %v306_v47 = vpop.f32.mrf.mxu0 }
 0x536   :  { %v307_v49 = vadd.f32 %v306_v47, %v280_v45 }
 0x53b   :  { %v326_v48 = vpop.f32.mrf.mxu3 }
 0x53c   :  { %v327_v50 = vadd.f32 %v326_v48, %v281_v46 }
 0x53e   :  { %v329_v51 = vmax.f32 %v307_v49, %v327_v50 }
 0x540   :  { %363 = vmatmul.f32.vlgmr.msra.gmra.mxu2 %v329_v51 }
 0x5c3   :  { %v364_v56 = vpop.f32.mrf.mxu2 }
 0x5c4   :  { %v365_v57 = vadd.f32 %v364_v56, %v346_v55 }
 0x5c6   :  { %v367_v58 = vmax.f32 %v365_v57, 0.0 }
 0x5c8   :  { %450 = vmatmul.msk.f32.vlgmr.msrb.gmra.mxu3 %vm204_vm7, %v367_v58 }
 0x64b   :  { %v397_v60 = vpop.f32.mrf.mxu3 }
 0x64c   :  { %v398_v61 = vadd.f32 %v397_v60, %v376_v59 }
 0x64e   :  { %401 = vst.msk [vmem:[#allocation11] sm:$0xf] %vm400_vm13, %v398_v61 }
 0x64f   :  { %429 = dma.vmem_to_hbm [thread:$0]  %s425_s27, 64, %s427_s29, [#allocation4]  }
 0x650   :  { %630 = dma.done.wait [#allocation4], 64  }
 0x651   :  { %631 = vsyncadd [#allocation4], 4294967232 }
 0x652   :  { %438 = vsyncpa [#allocation3], 1 }
 0x653   :  { %439 = vsyncpa [#allocation6], 1 }
 0x654   :  { %440 = vsyncpa [#allocation9], 1 }
 0x655   :  { %441 = vsyncpa [#allocation4], 1 }

</bundles_post_ra>
